<compile_context>
chip_gen: v6e
topology: v6e:2x2x1
jax: 0.10.0
libtpu: 0.0.40
codegen_flags: <defaults>
</compile_context>

<pallas_src>
import jax
import jax.numpy as jnp
from jax.experimental import pallas as pl
from jax.experimental.pallas import tpu as pltpu


def _round_up(n, m):
    return ((n + m - 1) // m) * m


def dqn_dense_kernel(x_ref, w1_ref, b1_ref, w2_ref, b2_ref, w3_ref, b3_ref, o_ref):
    # Three matmuls + bias + ReLU fused on one VMEM-resident activation tile.
    # Activations are cast to the weight dtype (f32 or bf16) for the MXU;
    # accumulation, bias-add and ReLU stay in f32.
    x = x_ref[...]
    w1 = w1_ref[...]
    h1 = jnp.dot(x.astype(w1.dtype), w1, preferred_element_type=jnp.float32)
    h1 = jnp.maximum(h1 + b1_ref[...], 0.0)

    w2 = w2_ref[...]
    h2 = jnp.dot(h1.astype(w2.dtype), w2, preferred_element_type=jnp.float32)
    h2 = jnp.maximum(h2 + b2_ref[...], 0.0)

    w3 = w3_ref[...]
    y = jnp.dot(h2.astype(w3.dtype), w3, preferred_element_type=jnp.float32)
    o_ref[...] = (y + b3_ref[...]).astype(o_ref.dtype)


def dqn_dense_forward(x, params, *, tb=512, mxu_dtype=jnp.bfloat16):
    """Forward pass of DQNDense.

    x: (B, input_dim) float32.
    params: dict with weights stored pre-transposed as (in, out) and biases (1, out).
    tb: batch tile size (rounded to the batch when the batch is small).
    mxu_dtype: dtype for the matmul operands (bf16 for v6e/v7x MXU, f32 for exact).
    """
    w1, b1, w2, b2, w3, b3 = (
        params["w1"], params["b1"], params["w2"], params["b2"], params["w3"], params["b3"]
    )
    B, D = x.shape
    A = w3.shape[1]

    # Lane-dense output: pad num_actions up to a multiple of 128 so the output
    # store is full-lane (no masked vst.msk); sliced back below.
    A_pad = max(128, _round_up(A, 128))
    if A_pad != A:
        w3 = jnp.pad(w3, ((0, 0), (0, A_pad - A)))
        b3 = jnp.pad(b3, ((0, 0), (0, A_pad - A)))

    # MXU operand dtype. Biases stay f32 (bias-add / ReLU run on the VPU in f32).
    w1 = w1.astype(mxu_dtype)
    w2 = w2.astype(mxu_dtype)
    w3 = w3.astype(mxu_dtype)

    # Batch grid: TB-row tiles streamed through VMEM with weights pinned resident.
    TB = min(tb, _round_up(B, 8))
    Bp = _round_up(B, TB)
    if Bp != B:
        x = jnp.pad(x, ((0, Bp - B), (0, 0)))
    grid = (Bp // TB,)

    def resident(a):
        # Full-array block, same block (0, 0) every grid step -> loaded once.
        return pl.BlockSpec(a.shape, lambda i: (0, 0))

    out = pl.pallas_call(
        dqn_dense_kernel,
        out_shape=jax.ShapeDtypeStruct((Bp, A_pad), jnp.float32),
        grid=grid,
        in_specs=[
            pl.BlockSpec((TB, D), lambda i: (i, 0)),     # x: streamed over batch
            resident(w1), resident(b1),
            resident(w2), resident(b2),
            resident(w3), resident(b3),
        ],
        out_specs=pl.BlockSpec((TB, A_pad), lambda i: (i, 0)),
        compiler_params=pltpu.CompilerParams(
            dimension_semantics=("parallel",),           # shard batch across TCs (v7x)
        ),
    )(x, w1, b1, w2, b2, w3, b3)

    return out[:B, :A]


def init_params(key, input_dim, n_hiddens, num_actions):
    """Deterministic synthetic params (shapes match nn.Linear, stored as (in, out))."""
    ks = jax.random.split(key, 6)

    def linear(kw, kb, fan_in, fan_out):
        # Kaiming-uniform-ish bound like torch.nn.Linear default init.
        bound = 1.0 / jnp.sqrt(jnp.float32(fan_in))
        w = jax.random.uniform(kw, (fan_in, fan_out), jnp.float32, -bound, bound)
        b = jax.random.uniform(kb, (1, fan_out), jnp.float32, -bound, bound)
        return w, b

    w1, b1 = linear(ks[0], ks[1], input_dim, n_hiddens)
    w2, b2 = linear(ks[2], ks[3], n_hiddens, n_hiddens)
    w3, b3 = linear(ks[4], ks[5], n_hiddens, num_actions)
    return {"w1": w1, "b1": b1, "w2": w2, "b2": b2, "w3": w3, "b3": b3}


if __name__ == "__main__":
    key = jax.random.PRNGKey(0)
    k_x, k_p = jax.random.split(key)

    # Small shapes consistent with the module: batch=8, input_dim=4,
    # n_hiddens=32 (stand-in for 256), num_actions=2 (e.g. CartPole).
    B, INPUT_DIM, N_HIDDENS, NUM_ACTIONS = 8, 4, 32, 2

    x = jax.random.normal(k_x, (B, INPUT_DIM), jnp.float32)
    params = init_params(k_p, INPUT_DIM, N_HIDDENS, NUM_ACTIONS)

    # Pure-JAX f32 reference of the same forward pass.
    h = jnp.maximum(x @ params["w1"] + params["b1"], 0.0)
    h = jnp.maximum(h @ params["w2"] + params["b2"], 0.0)
    ref = h @ params["w3"] + params["b3"]

    # Exact f32 MXU path: must match the f32 reference tightly.
    out_f32 = jax.block_until_ready(
        dqn_dense_forward(x, params, mxu_dtype=jnp.float32)
    )
    assert out_f32.shape == (B, NUM_ACTIONS)
    assert jnp.allclose(out_f32, ref, atol=1e-5, rtol=1e-5)

    # bf16 MXU path (the v6e/v7x-preferred configuration): looser tolerance
    # since matmul operands are rounded to bf16 (accumulation stays f32).
    out_bf16 = jax.block_until_ready(
        dqn_dense_forward(x, params, mxu_dtype=jnp.bfloat16)
    )
    assert out_bf16.shape == (B, NUM_ACTIONS)
    assert jnp.allclose(out_bf16, ref, atol=2e-2, rtol=2e-2)

    print("KERNEL_OK")
</pallas_src>

<mosaic_0001>
module attributes {stable_mosaic.version = 11 : i64} {
  func.func @dqn_dense_kernel(%arg0: i32, %arg1: memref<8x4xf32, #tpu.memory_space<vmem>>, %arg2: memref<4x32xf32, #tpu.memory_space<vmem>>, %arg3: memref<1x32xf32, #tpu.memory_space<vmem>>, %arg4: memref<32x32xf32, #tpu.memory_space<vmem>>, %arg5: memref<1x32xf32, #tpu.memory_space<vmem>>, %arg6: memref<32x128xf32, #tpu.memory_space<vmem>>, %arg7: memref<1x128xf32, #tpu.memory_space<vmem>>, %arg8: memref<8x128xf32, #tpu.memory_space<vmem>>) attributes {dimension_semantics = [#tpu.dimension_semantics<parallel>], iteration_bounds = array<i64: 1>, scalar_prefetch = 0 : i64, scratch_operands = 0 : i64, tpu.core_type = #tpu.core_type<tc>, window_params = [{transform_indices = @transform_0, window_bounds = array<i64: 8, 4>}, {pipeline_mode = #tpu.pipeline_mode<synchronous>, transform_indices = @transform_1, window_bounds = array<i64: 4, 32>}, {pipeline_mode = #tpu.pipeline_mode<synchronous>, transform_indices = @transform_2, window_bounds = array<i64: 1, 32>}, {pipeline_mode = #tpu.pipeline_mode<synchronous>, transform_indices = @transform_3, window_bounds = array<i64: 32, 32>}, {pipeline_mode = #tpu.pipeline_mode<synchronous>, transform_indices = @transform_4, window_bounds = array<i64: 1, 32>}, {pipeline_mode = #tpu.pipeline_mode<synchronous>, transform_indices = @transform_5, window_bounds = array<i64: 32, 128>}, {pipeline_mode = #tpu.pipeline_mode<synchronous>, transform_indices = @transform_6, window_bounds = array<i64: 1, 128>}, {transform_indices = @transform_7, window_bounds = array<i64: 8, 128>}]} {
    %c0 = arith.constant 0 : index
    %c0_0 = arith.constant 0 : index
    %0 = vector.load %arg1[%c0, %c0_0] : memref<8x4xf32, #tpu.memory_space<vmem>>, vector<8x4xf32>
    %c0_1 = arith.constant 0 : index
    %c0_2 = arith.constant 0 : index
    %1 = vector.load %arg2[%c0_1, %c0_2] : memref<4x32xf32, #tpu.memory_space<vmem>>, vector<4x32xf32>
    %cst = arith.constant dense<0.000000e+00> : vector<8x32xf32>
    %2 = tpu.matmul %0, %1, %cst {dimension_numbers = #tpu.dot_dimension_numbers<[1], [0], [0], [1], [0, 0, 1, 1], [], []>} : vector<8x4xf32>, vector<4x32xf32>, vector<8x32xf32> -> vector<8x32xf32>
    %c0_3 = arith.constant 0 : index
    %c0_4 = arith.constant 0 : index
    %3 = vector.load %arg3[%c0_3, %c0_4] : memref<1x32xf32, #tpu.memory_space<vmem>>, vector<1x32xf32>
    %4 = vector.broadcast %3 : vector<1x32xf32> to vector<8x32xf32>
    %5 = arith.addf %2, %4 : vector<8x32xf32>
    %cst_5 = arith.constant 0.000000e+00 : f32
    %6 = vector.broadcast %cst_5 : f32 to vector<8x32xf32>
    %7 = arith.maximumf %5, %6 : vector<8x32xf32>
    %c0_6 = arith.constant 0 : index
    %c0_7 = arith.constant 0 : index
    %8 = vector.load %arg4[%c0_6, %c0_7] : memref<32x32xf32, #tpu.memory_space<vmem>>, vector<32x32xf32>
    %cst_8 = arith.constant dense<0.000000e+00> : vector<8x32xf32>
    %9 = tpu.matmul %7, %8, %cst_8 {dimension_numbers = #tpu.dot_dimension_numbers<[1], [0], [0], [1], [0, 0, 1, 1], [], []>} : vector<8x32xf32>, vector<32x32xf32>, vector<8x32xf32> -> vector<8x32xf32>
    %c0_9 = arith.constant 0 : index
    %c0_10 = arith.constant 0 : index
    %10 = vector.load %arg5[%c0_9, %c0_10] : memref<1x32xf32, #tpu.memory_space<vmem>>, vector<1x32xf32>
    %11 = vector.broadcast %10 : vector<1x32xf32> to vector<8x32xf32>
    %12 = arith.addf %9, %11 : vector<8x32xf32>
    %cst_11 = arith.constant 0.000000e+00 : f32
    %13 = vector.broadcast %cst_11 : f32 to vector<8x32xf32>
    %14 = arith.maximumf %12, %13 : vector<8x32xf32>
    %c0_12 = arith.constant 0 : index
    %c0_13 = arith.constant 0 : index
    %15 = vector.load %arg6[%c0_12, %c0_13] : memref<32x128xf32, #tpu.memory_space<vmem>>, vector<32x128xf32>
    %cst_14 = arith.constant dense<0.000000e+00> : vector<8x128xf32>
    %16 = tpu.matmul %14, %15, %cst_14 {dimension_numbers = #tpu.dot_dimension_numbers<[1], [0], [0], [1], [0, 0, 1, 1], [], []>} : vector<8x32xf32>, vector<32x128xf32>, vector<8x128xf32> -> vector<8x128xf32>
    %c0_15 = arith.constant 0 : index
    %c0_16 = arith.constant 0 : index
    %17 = vector.load %arg7[%c0_15, %c0_16] : memref<1x128xf32, #tpu.memory_space<vmem>>, vector<1x128xf32>
    %18 = vector.broadcast %17 : vector<1x128xf32> to vector<8x128xf32>
    %19 = arith.addf %16, %18 : vector<8x128xf32>
    %c0_17 = arith.constant 0 : index
    %c0_18 = arith.constant 0 : index
    %20 = vector.load %arg8[%c0_17, %c0_18] : memref<8x128xf32, #tpu.memory_space<vmem>>, vector<8x128xf32>
    tpu.vector_store %arg8[%c0_17, %c0_18], %19 {strides = array<i32>} : memref<8x128xf32, #tpu.memory_space<vmem>>, vector<8x128xf32>,
    return
  }
  func.func @transform_0(%arg0: i32) -> (i32, i32) {
    %c0_i32 = arith.constant 0 : i32
    %c0_i32_0 = arith.constant 0 : i32
    return %arg0, %c0_i32 : i32, i32
  }
  func.func @transform_1(%arg0: i32) -> (i32, i32) {
    %c0_i32 = arith.constant 0 : i32
    %c0_i32_0 = arith.constant 0 : i32
    %c0_i32_1 = arith.constant 0 : i32
    return %c0_i32, %c0_i32_0 : i32, i32
  }
  func.func @transform_2(%arg0: i32) -> (i32, i32) {
    %c0_i32 = arith.constant 0 : i32
    %c0_i32_0 = arith.constant 0 : i32
    %c0_i32_1 = arith.constant 0 : i32
    return %c0_i32, %c0_i32_0 : i32, i32
  }
  func.func @transform_3(%arg0: i32) -> (i32, i32) {
    %c0_i32 = arith.constant 0 : i32
    %c0_i32_0 = arith.constant 0 : i32
    %c0_i32_1 = arith.constant 0 : i32
    return %c0_i32, %c0_i32_0 : i32, i32
  }
  func.func @transform_4(%arg0: i32) -> (i32, i32) {
    %c0_i32 = arith.constant 0 : i32
    %c0_i32_0 = arith.constant 0 : i32
    %c0_i32_1 = arith.constant 0 : i32
    return %c0_i32, %c0_i32_0 : i32, i32
  }
  func.func @transform_5(%arg0: i32) -> (i32, i32) {
    %c0_i32 = arith.constant 0 : i32
    %c0_i32_0 = arith.constant 0 : i32
    %c0_i32_1 = arith.constant 0 : i32
    return %c0_i32, %c0_i32_0 : i32, i32
  }
  func.func @transform_6(%arg0: i32) -> (i32, i32) {
    %c0_i32 = arith.constant 0 : i32
    %c0_i32_0 = arith.constant 0 : i32
    %c0_i32_1 = arith.constant 0 : i32
    return %c0_i32, %c0_i32_0 : i32, i32
  }
  func.func @transform_7(%arg0: i32) -> (i32, i32) {
    %c0_i32 = arith.constant 0 : i32
    %c0_i32_0 = arith.constant 0 : i32
    return %arg0, %c0_i32 : i32, i32
  }
}

</mosaic_0001>

<bundles_post_ra>
// kernel: tpu_custom_call.1
= control target key start
LH: loop header
LB: loop body
LE: loop exit
PB: predicated region body
PF: predicated region fallthrough
CT: control target
= control target key end

     0   :  { %12 = vsyncpa [#allocation3], 0  ;;  %s522_s0 = inlined_call_operand.vmem [shape: f32[8,4], index: 0, kind: input, shape index: {}]   ;;  %s523_s1 = inlined_call_operand.vmem [shape: f32[4,32], index: 1, kind: input, shape index: {}]   ;;  %s524_s2 = inlined_call_operand.vmem [shape: f32[1,32], index: 2, kind: input, shape index: {}]   ;;  %s525_s3 = inlined_call_operand.hbm [shape: f32[32,32], index: 3, kind: input, shape index: {}]   ;;  %s526_s4 = inlined_call_operand.vmem [shape: f32[1,32], index: 4, kind: input, shape index: {}]   ;;  %s527_s5 = inlined_call_operand.hbm [shape: f32[32,128], index: 5, kind: input, shape index: {}]   ;;  %s528_s6 = inlined_call_operand.vmem [shape: f32[1,128], index: 6, kind: input, shape index: {}]   ;;  %s529_s7 = inlined_call_operand.hbm [shape: f32[8,128], index: 7, kind: output, shape index: {}]  }
   0x1   :  { %13 = vsyncpa [#allocation6], 0 }
   0x2   :  { %14 = vsyncpa [#allocation4], 0  ;;  %s449_s24 = smov [#allocation2]  }
   0x3   :  { %s26_s25 = sshll.u32 %s449_s24, 4  ;;  %s27_s25 = int_to_ptr.vmem [resolvable:$true] %s26_s25 }
   0x4   :  { %s391_s26 = scalar_lea.vmem %s27_s25, 512  ;;  %p396_p1 = scmp.lt.s32.totalorder %s27_s25, %s27_s25 }
   0x5   :  { %p392_p0 = scmp.ne.s32.totalorder %s27_s25, %s391_s26  ;;  %p397_p2 = scmp.lt.s32.totalorder %s391_s26, %s391_s26 }
   0x7   :  { %p398_p3 = por %p397_p2, %p396_p1 }
   0x9   :  { %p399_p4 = pnand %p398_p3, %p392_p0 }
   0xb   :  { %402 = shalt.err (!%p399_p4)
}
   0xc   :  { %s450_s27 = smov 128   ;;  %s451_s28 = smov 8  }
   0xd   :  { %32 = dma.hbm_to_vmem [thread:$0]  %s525_s3, 512, %s27_s25, [#allocation3], %s450_s27, %s450_s27, %s451_s28  }
   0xe   :  { %s452_s8 = smov [#allocation5]  }
   0xf   :  { %s40_s9 = sshll.u32 %s452_s8, 4  ;;  %s41_s9 = int_to_ptr.vmem [resolvable:$true] %s40_s9 }
  0x10   :  { %s411_s10 = scalar_lea.vmem %s41_s9, 512  ;;  %p416_p6 = scmp.lt.s32.totalorder %s41_s9, %s41_s9 }
  0x11   :  { %p412_p5 = scmp.ne.s32.totalorder %s41_s9, %s411_s10  ;;  %p417_p7 = scmp.lt.s32.totalorder %s411_s10, %s411_s10 }
  0x13   :  { %p418_p8 = por %p417_p7, %p416_p6 }
  0x15   :  { %p419_p9 = pnand %p418_p8, %p412_p5 }
  0x17   :  { %422 = shalt.err (!%p419_p9)
}
  0x18   :  { %46 = dma.hbm_to_vmem [thread:$0]  %s527_s5, 512, %s41_s9, [#allocation6], %s450_s27, %s450_s27, %s451_s28  }
  0x19   :  { %443 = dma.done.wait [#allocation3], 512  }
  0x1a   :  { %444 = vsyncadd [#allocation3], 4294966784 }
  0x1b   :  { %445 = dma.done.wait [#allocation6], 512  }
  0x1c   :  { %446 = vsyncadd [#allocation6], 4294966784  ;;  %v453_v0 = vmov 0.0   ;;  %vm454_vm0 = vmmov 0   ;;  %vm68_vm1 = vcmask 1043456   ;;  %vm64_vm2 = vcmask 31744  }
  0x1d   :  { %349 = vmatprep.subr.mxu0 %v453_v0  ;;  %351 = vmatprep.mubr.msk.f32.mxu0 %vm454_vm0, %v453_v0  ;;  %v56_v1 = vld [vmem:[%s523_s1] sm:$0xf]  ;;  %v146_v3 = vld [vmem:[#allocation2 + $0x18] sm:$0xff]  ;;  %v145_v4 = vld [vmem:[#allocation2 + $0x10] sm:$0xff]  ;;  %vm154_vm3 = vcmask 261120   ;;  %s455_s18 = smov [#allocation7]  }
  0x1e   :  { %354 = vmatprep.subr.mxu1 %v453_v0  ;;  %362 = vmatprep.mubr.msk.f32.mxu1 %vm454_vm0, %v453_v0  ;;  %v55_v2 = vld [vmem:[%s522_s0] sm:$0xff]  ;;  %v144_v5 = vld [vmem:[#allocation2 + $0x8] sm:$0xff]  ;;  %v232_v7 = vld [vmem:[#allocation5 + $0x18] sm:$0xff]  ;;  %s320_s19 = sshll.u32 %s455_s18, 4  ;;  %s321_s19 = int_to_ptr.vmem [resolvable:$true] %s320_s19 }
  0x1f   :  { %350 = vmatpush3.msk.msra.mxu0 %vm68_vm1, %v56_v1  ;;  %355 = vmatpush3.msra.mxu1 %v146_v3  ;;  %v143_v6 = vld [vmem:[#allocation2] sm:$0xff]  ;;  %v231_v13 = vld [vmem:[#allocation5 + $0x10] sm:$0xff]  ;;  %v230_v14 = vld [vmem:[#allocation5 + $0x8] sm:$0xff]  ;;  %s423_s20 = scalar_lea.vmem %s321_s19, 128  ;;  %p428_p11 = scmp.lt.s32.totalorder %s321_s19, %s321_s19 }
  0x20   :  { %352 = vmatmul.mubr.msk.f32.vlgmr.msra.gmra.mxu0 %vm64_vm2, %v55_v2  ;;  %356 = vmatprep.subr.mxu1 %v453_v0  ;;  %v330_v8 = vld [vmem:[%s524_s2] ss:$0 sm:$0xff]  ;;  %p424_p10 = scmp.ne.s32.totalorder %s321_s19, %s423_s20  ;;  %p429_p12 = scmp.lt.s32.totalorder %s423_s20, %s423_s20 }
  0x21   :  { %365 = vmatprep.subr.mxu0 %v453_v0  ;;  %373 = vmatprep.mubr.msk.f32.mxu0 %vm454_vm0, %v453_v0  ;;  %v229_v15 = vld [vmem:[#allocation5] sm:$0xff] }
  0x22   :  { %357 = vmatpush3.msra.mxu1 %v145_v4  ;;  %366 = vmatpush3.msra.mxu0 %v232_v7  ;;  %v333_v16 = vld [vmem:[%s526_s4] ss:$0 sm:$0xff]  ;;  %p430_p13 = por %p429_p12, %p428_p11 }
  0x23   :  { %358 = vmatprep.subr.mxu1 %v453_v0  ;;  %367 = vmatprep.subr.mxu0 %v453_v0  ;;  %v335_v21 = vld [vmem:[%s528_s6] ss:$0 sm:$0xff] }
  0x24   :  { %359 = vmatpush3.msra.mxu1 %v144_v5  ;;  %368 = vmatpush3.msra.mxu0 %v231_v13  ;;  %p431_p0 = pnand %p430_p13, %p424_p10 }
  0x25   :  { %360 = vmatprep.subr.mxu1 %v453_v0  ;;  %369 = vmatprep.subr.mxu0 %v453_v0 }
  0x26   :  { %361 = vmatpush3.msra.mxu1 %v143_v6  ;;  %370 = vmatpush3.msra.mxu0 %v230_v14 }
  0x27   :  { %371 = vmatprep.subr.mxu0 %v453_v0 }
  0x28   :  { %372 = vmatpush3.msra.mxu0 %v229_v15 }
  0xe0   :  { %v138_v9 = vpop.f32.mrf.mxu0 }
  0xe1   :  { %v139_v10 = vadd.f32 %v330_v8, %v138_v9 }
  0xe2   :  { %v353_v11 = vpop.f32.mrf.mxu0 }
  0xe3   :  { %v142_v12 = vmax.f32 %v139_v10, 0.0 }
  0xe5   :  { %363 = vmatmul.mubr.msk.f32.vlgmr.msra.gmra.mxu1 %vm154_vm3, %v142_v12 }
 0x1a5   :  { %v224_v17 = vpop.f32.mrf.mxu1 }
 0x1a6   :  { %v225_v18 = vadd.f32 %v333_v16, %v224_v17 }
 0x1a7   :  { %v364_v19 = vpop.f32.mrf.mxu1 }
 0x1a8   :  { %v228_v20 = vmax.f32 %v225_v18, 0.0 }
 0x1aa   :  { %374 = vmatmul.mubr.msk.f32.vlgmr.msra.gmra.mxu0 %vm154_vm3, %v228_v20 }
 0x26a   :  { %v309_v22 = vpop.f32.mrf.mxu0 }
 0x26b   :  { %v310_v23 = vadd.f32 %v335_v21, %v309_v22 }
 0x26c   :  { %v375_v24 = vpop.f32.mrf.mxu0 }
 0x26d   :  { %313 = vst [vmem:[#allocation7] sm:$0xff] %v310_v23 }
 0x26e   :  { %434 = shalt.err (!%p431_p0)
}
 0x26f   :  { %323 = dma.vmem_to_hbm [thread:$0]  %s321_s19, 128, %s529_s7, [#allocation4]  }
 0x270   :  { %447 = dma.done.wait [#allocation4], 128  }
 0x271   :  { %448 = vsyncadd [#allocation4], 4294967168 }
 0x272   :  { %327 = vsyncpa [#allocation3], 1 }
 0x273   :  { %328 = vsyncpa [#allocation6], 1 }
 0x274   :  { %329 = vsyncpa [#allocation4], 1 }

</bundles_post_ra>
